<compile_context>
chip_gen: v6e
topology: v6e:2x2x1
jax: 0.10.0
libtpu: 0.0.40
codegen_flags: <defaults>
</compile_context>

<pallas_src>
import functools

import jax
import jax.numpy as jnp
from jax.experimental import pallas as pl
from jax.experimental.pallas import tpu as pltpu


def _chip_budgets():
    """(target block bytes, vmem_limit_bytes, want_even_multi_step)."""
    try:
        kind = jax.devices()[0].device_kind.lower()
    except Exception:
        kind = ""
    if "v7" in kind:
        # 64 MiB physical VMEM, 2 TensorCores: modest double-buffered blocks,
        # keep an even number of grid steps so both cores get equal work.
        return 8 * 2**20, 40 * 2**20, True
    if "v6" in kind or "v5" in kind or "v4" in kind:
        # 128 MiB physical VMEM, 1 TensorCore: big blocks, single step is fine.
        return 16 * 2**20, 96 * 2**20, False
    # Unknown chip: stay VMEM-conservative.
    return 8 * 2**20, 40 * 2**20, True


def _pick_row_tile(rows, row_bytes, target_bytes, want_even_steps):
    """Largest legal row tile (multiple of 8, or all rows) within the budget.

    On 2-TC chips prefer a tile that yields an even number (>= 2) of grid
    steps so megacore sharding keeps both TensorCores busy.
    """
    cands = [d for d in range(1, rows + 1)
             if rows % d == 0 and (d % 8 == 0 or d == rows)]
    fitting = [d for d in cands if d * row_bytes <= target_bytes]
    if not fitting:
        # Smallest legal tile; vmem_limit_bytes provides the headroom.
        return min(cands)
    if want_even_steps:
        multi = [d for d in fitting if (rows // d) >= 2 and (rows // d) % 2 == 0]
        if multi:
            return max(multi)
    return max(fitting)


def mixpool_kernel(w_ref, x_ref, out_ref, *, img_w, kh, kw, pw):
    # w_ref  : SMEM (4,) f32 scalar-prefetch — sigmoid(weight).
    # x_ref  : VMEM (R, kh*img_w) — each row is one (n, c, window-row) group.
    # out_ref: VMEM (R, 2*pw)     — lanes [0:pw) = pos, [pw:2*pw) = ori.
    inv_k = 1.0 / float(kh * kw)

    # ---- combine the kh image rows of every window-row group ---------------
    # Contiguous static lane slices of width img_w; per-chunk ref loads keep
    # the live set small (no full-block f32 temporary).
    rsum = x_ref[:, 0:img_w].astype(jnp.float32)
    rmax = rsum
    for j in range(1, kh):                       # static unroll, kh is small
        seg = x_ref[:, j * img_w:(j + 1) * img_w].astype(jnp.float32)
        rsum = rsum + seg
        rmax = jnp.maximum(rmax, seg)

    s0 = w_ref[0]          # sigmoid(weight) scalars from SMEM (hoisted)
    s1 = w_ref[1]
    s2 = w_ref[2]
    s3 = w_ref[3]

    # ---- reduce each of the pw window columns and store it immediately -----
    for ow in range(pw):                         # static unroll, pw is small
        cols = slice(ow * kw, (ow + 1) * kw)
        a = jnp.sum(rsum[:, cols], axis=-1, keepdims=True) * inv_k   # (R, 1)
        m = jnp.max(rmax[:, cols], axis=-1, keepdims=True)           # (R, 1)
        out_ref[:, ow:ow + 1] = (a * s0 + m * s1).astype(out_ref.dtype)       # pos
        out_ref[:, pw + ow:pw + ow + 1] = (a * s2 + m * s3).astype(out_ref.dtype)  # ori


def mixpool_forward(x, weight, pool_size):
    """x: (N, C, H, W) NCHW; weight: (4,) raw (pre-sigmoid); pool_size: int or (ph, pw)."""
    N, C, H, W = x.shape
    if isinstance(pool_size, (tuple, list)):
        ph, pw = pool_size
    else:
        ph = pw = pool_size
    assert H % ph == 0 and W % pw == 0, "adaptive pool assumed evenly divisible"
    kh, kw = H // ph, W // pw
    L = ph * pw

    rows = N * C * ph          # one row per (n, c, window-row) group
    khw = kh * W               # lane axis of the merged view (contiguous bytes)

    # Free row-major merge of contiguous dims: (N, C, ph, kh, W) -> (rows, kh*W).
    x2 = x.reshape(rows, khw)

    # sigmoid(weight): 4 elements, applied once; consumed as SMEM scalars.
    w_sig = jax.nn.sigmoid(weight.astype(jnp.float32)).reshape(4)

    itemsize = jnp.dtype(x.dtype).itemsize
    target_block, vmem_limit, want_even_steps = _chip_budgets()
    r_tile = _pick_row_tile(rows, khw * itemsize, target_block, want_even_steps)

    kernel = functools.partial(mixpool_kernel, img_w=W, kh=kh, kw=kw, pw=pw)

    out_bytes = rows * 2 * pw * itemsize
    out2 = pl.pallas_call(
        kernel,
        out_shape=jax.ShapeDtypeStruct((rows, 2 * pw), x.dtype),
        grid_spec=pltpu.PrefetchScalarGridSpec(
            num_scalar_prefetch=1,                       # the 4 sigmoid weights
            grid=(rows // r_tile,),
            in_specs=[pl.BlockSpec((r_tile, khw), lambda r, w: (r, 0))],
            out_specs=pl.BlockSpec((r_tile, 2 * pw), lambda r, w: (r, 0)),
        ),
        compiler_params=pltpu.CompilerParams(
            dimension_semantics=("parallel",),
            vmem_limit_bytes=vmem_limit,
        ),
        cost_estimate=pl.CostEstimate(
            flops=2 * N * C * H * W,
            transcendentals=0,
            bytes_accessed=int(x.size * itemsize + out_bytes),
        ),
    )(w_sig, x2)

    # Tiny output: unpack (rows, 2*pw) -> (N, C, L) pos / ori in the wrapper.
    feat = out2.reshape(N, C, ph, 2 * pw)
    pos = feat[..., :pw].reshape(N, C, L)      # adaptive pool + flatten(2) mix
    ori = feat[..., pw:].reshape(N, C, L)
    return pos, ori


def mixpool_reference(x, weight, pool_size):
    """Pure-JAX reference mirroring the PyTorch MixPool.forward."""
    N, C, H, W = x.shape
    if isinstance(pool_size, (tuple, list)):
        ph, pw = pool_size
    else:
        ph = pw = pool_size
    kh, kw = H // ph, W // pw
    xr = (
        x.reshape(N, C, ph, kh, pw, kw)
        .transpose(0, 1, 2, 4, 3, 5)
        .reshape(N, C, ph * pw, kh * kw)
    )
    avg = jnp.mean(xr, axis=-1)
    mx = jnp.max(xr, axis=-1)
    w = jax.nn.sigmoid(weight)
    pos = avg * w[0] + mx * w[1]
    ori = avg * w[2] + mx * w[3]
    return pos, ori


if __name__ == "__main__":
    key = jax.random.PRNGKey(0)
    N, C, H, W = 2, 4, 16, 16
    pool_size = 4  # adaptive pool to 4x4 -> flatten(2) gives L = 16

    x = jax.random.normal(key, (N, C, H, W), dtype=jnp.float32)
    # MixPool default (non-learnable, non-single): buffer of ones, shape (4,)
    weight = jnp.ones((4,), dtype=jnp.float32)

    pos, ori = mixpool_forward(x, weight, pool_size)
    pos = jax.block_until_ready(pos)
    ori = jax.block_until_ready(ori)

    pos_ref, ori_ref = mixpool_reference(x, weight, pool_size)
    assert pos.shape == (N, C, pool_size * pool_size)
    assert ori.shape == (N, C, pool_size * pool_size)
    assert jnp.allclose(pos, pos_ref, atol=1e-5, rtol=1e-5)
    assert jnp.allclose(ori, ori_ref, atol=1e-5, rtol=1e-5)
    print("KERNEL_OK")
</pallas_src>

<mosaic_0001>
module attributes {stable_mosaic.version = 11 : i64} {
  func.func @mixpool_kernel(%arg0: i32, %arg1: memref<4xf32, #tpu.memory_space<smem>>, %arg2: memref<16x64xf32, #tpu.memory_space<vmem>>, %arg3: memref<16x8xf32, #tpu.memory_space<vmem>>) attributes {dimension_semantics = [#tpu.dimension_semantics<parallel>], iteration_bounds = array<i64: 2>, scalar_prefetch = 1 : i64, scratch_operands = 0 : i64, tpu.core_type = #tpu.core_type<tc>, window_params = [{transform_indices = @transform_0, window_bounds = array<i64: 16, 64>}, {transform_indices = @transform_1, window_bounds = array<i64: 16, 8>}]} {
    %c0 = arith.constant 0 : index
    %c0_0 = arith.constant 0 : index
    %0 = vector.load %arg2[%c0, %c0_0] : memref<16x64xf32, #tpu.memory_space<vmem>>, vector<16x16xf32>
    %c0_1 = arith.constant 0 : index
    %c16 = arith.constant 16 : index
    %1 = vector.load %arg2[%c0_1, %c16] : memref<16x64xf32, #tpu.memory_space<vmem>>, vector<16x16xf32>
    %2 = arith.addf %0, %1 : vector<16x16xf32>
    %3 = arith.maximumf %0, %1 : vector<16x16xf32>
    %c0_2 = arith.constant 0 : index
    %c32 = arith.constant 32 : index
    %4 = vector.load %arg2[%c0_2, %c32] : memref<16x64xf32, #tpu.memory_space<vmem>>, vector<16x16xf32>
    %5 = arith.addf %2, %4 : vector<16x16xf32>
    %6 = arith.maximumf %3, %4 : vector<16x16xf32>
    %c0_3 = arith.constant 0 : index
    %c48 = arith.constant 48 : index
    %7 = vector.load %arg2[%c0_3, %c48] : memref<16x64xf32, #tpu.memory_space<vmem>>, vector<16x16xf32>
    %8 = arith.addf %5, %7 : vector<16x16xf32>
    %9 = arith.maximumf %6, %7 : vector<16x16xf32>
    %c0_4 = arith.constant 0 : index
    %10 = memref.load %arg1[%c0_4] : memref<4xf32, #tpu.memory_space<smem>>
    %c1 = arith.constant 1 : index
    %11 = memref.load %arg1[%c1] : memref<4xf32, #tpu.memory_space<smem>>
    %c2 = arith.constant 2 : index
    %12 = memref.load %arg1[%c2] : memref<4xf32, #tpu.memory_space<smem>>
    %c3 = arith.constant 3 : index
    %13 = memref.load %arg1[%c3] : memref<4xf32, #tpu.memory_space<smem>>
    %14 = vector.extract_strided_slice %8 {offsets = [0, 0], sizes = [16, 4], strides = [1, 1]} : vector<16x16xf32> to vector<16x4xf32>
    %cst = arith.constant dense<0.000000e+00> : vector<16xf32>
    %15 = vector.multi_reduction <add>, %14, %cst [1] : vector<16x4xf32> to vector<16xf32>
    %16 = vector.shape_cast %15 : vector<16xf32> to vector<16x1xf32>
    %cst_5 = arith.constant 6.250000e-02 : f32
    %17 = vector.broadcast %cst_5 : f32 to vector<16x1xf32>
    %18 = arith.mulf %16, %17 : vector<16x1xf32>
    %19 = vector.extract_strided_slice %9 {offsets = [0, 0], sizes = [16, 4], strides = [1, 1]} : vector<16x16xf32> to vector<16x4xf32>
    %cst_6 = arith.constant dense<0xFF800000> : vector<16xf32>
    %20 = vector.multi_reduction <maximumf>, %19, %cst_6 [1] : vector<16x4xf32> to vector<16xf32>
    %21 = vector.shape_cast %20 : vector<16xf32> to vector<16x1xf32>
    %22 = vector.broadcast %10 : f32 to vector<16x1xf32>
    %23 = arith.mulf %18, %22 : vector<16x1xf32>
    %24 = vector.broadcast %11 : f32 to vector<16x1xf32>
    %25 = arith.mulf %21, %24 : vector<16x1xf32>
    %26 = arith.addf %23, %25 : vector<16x1xf32>
    %c0_7 = arith.constant 0 : index
    %c0_8 = arith.constant 0 : index
    %27 = vector.load %arg3[%c0_7, %c0_8] : memref<16x8xf32, #tpu.memory_space<vmem>>, vector<16x1xf32>
    tpu.vector_store %arg3[%c0_7, %c0_8], %26 {strides = array<i32>} : memref<16x8xf32, #tpu.memory_space<vmem>>, vector<16x1xf32>,
    %28 = vector.broadcast %12 : f32 to vector<16x1xf32>
    %29 = arith.mulf %18, %28 : vector<16x1xf32>
    %30 = vector.broadcast %13 : f32 to vector<16x1xf32>
    %31 = arith.mulf %21, %30 : vector<16x1xf32>
    %32 = arith.addf %29, %31 : vector<16x1xf32>
    %c0_9 = arith.constant 0 : index
    %c4 = arith.constant 4 : index
    %33 = vector.load %arg3[%c0_9, %c4] : memref<16x8xf32, #tpu.memory_space<vmem>>, vector<16x1xf32>
    tpu.vector_store %arg3[%c0_9, %c4], %32 {strides = array<i32>} : memref<16x8xf32, #tpu.memory_space<vmem>>, vector<16x1xf32>,
    %34 = vector.extract_strided_slice %8 {offsets = [0, 4], sizes = [16, 4], strides = [1, 1]} : vector<16x16xf32> to vector<16x4xf32>
    %cst_10 = arith.constant dense<0.000000e+00> : vector<16xf32>
    %35 = vector.multi_reduction <add>, %34, %cst_10 [1] : vector<16x4xf32> to vector<16xf32>
    %36 = vector.shape_cast %35 : vector<16xf32> to vector<16x1xf32>
    %cst_11 = arith.constant 6.250000e-02 : f32
    %37 = vector.broadcast %cst_11 : f32 to vector<16x1xf32>
    %38 = arith.mulf %36, %37 : vector<16x1xf32>
    %39 = vector.extract_strided_slice %9 {offsets = [0, 4], sizes = [16, 4], strides = [1, 1]} : vector<16x16xf32> to vector<16x4xf32>
    %cst_12 = arith.constant dense<0xFF800000> : vector<16xf32>
    %40 = vector.multi_reduction <maximumf>, %39, %cst_12 [1] : vector<16x4xf32> to vector<16xf32>
    %41 = vector.shape_cast %40 : vector<16xf32> to vector<16x1xf32>
    %42 = vector.broadcast %10 : f32 to vector<16x1xf32>
    %43 = arith.mulf %38, %42 : vector<16x1xf32>
    %44 = vector.broadcast %11 : f32 to vector<16x1xf32>
    %45 = arith.mulf %41, %44 : vector<16x1xf32>
    %46 = arith.addf %43, %45 : vector<16x1xf32>
    %c0_13 = arith.constant 0 : index
    %c1_14 = arith.constant 1 : index
    %47 = vector.load %arg3[%c0_13, %c1_14] : memref<16x8xf32, #tpu.memory_space<vmem>>, vector<16x1xf32>
    tpu.vector_store %arg3[%c0_13, %c1_14], %46 {strides = array<i32>} : memref<16x8xf32, #tpu.memory_space<vmem>>, vector<16x1xf32>,
    %48 = vector.broadcast %12 : f32 to vector<16x1xf32>
    %49 = arith.mulf %38, %48 : vector<16x1xf32>
    %50 = vector.broadcast %13 : f32 to vector<16x1xf32>
    %51 = arith.mulf %41, %50 : vector<16x1xf32>
    %52 = arith.addf %49, %51 : vector<16x1xf32>
    %c0_15 = arith.constant 0 : index
    %c5 = arith.constant 5 : index
    %53 = vector.load %arg3[%c0_15, %c5] : memref<16x8xf32, #tpu.memory_space<vmem>>, vector<16x1xf32>
    tpu.vector_store %arg3[%c0_15, %c5], %52 {strides = array<i32>} : memref<16x8xf32, #tpu.memory_space<vmem>>, vector<16x1xf32>,
    %54 = vector.extract_strided_slice %8 {offsets = [0, 8], sizes = [16, 4], strides = [1, 1]} : vector<16x16xf32> to vector<16x4xf32>
    %cst_16 = arith.constant dense<0.000000e+00> : vector<16xf32>
    %55 = vector.multi_reduction <add>, %54, %cst_16 [1] : vector<16x4xf32> to vector<16xf32>
    %56 = vector.shape_cast %55 : vector<16xf32> to vector<16x1xf32>
    %cst_17 = arith.constant 6.250000e-02 : f32
    %57 = vector.broadcast %cst_17 : f32 to vector<16x1xf32>
    %58 = arith.mulf %56, %57 : vector<16x1xf32>
    %59 = vector.extract_strided_slice %9 {offsets = [0, 8], sizes = [16, 4], strides = [1, 1]} : vector<16x16xf32> to vector<16x4xf32>
    %cst_18 = arith.constant dense<0xFF800000> : vector<16xf32>
    %60 = vector.multi_reduction <maximumf>, %59, %cst_18 [1] : vector<16x4xf32> to vector<16xf32>
    %61 = vector.shape_cast %60 : vector<16xf32> to vector<16x1xf32>
    %62 = vector.broadcast %10 : f32 to vector<16x1xf32>
    %63 = arith.mulf %58, %62 : vector<16x1xf32>
    %64 = vector.broadcast %11 : f32 to vector<16x1xf32>
    %65 = arith.mulf %61, %64 : vector<16x1xf32>
    %66 = arith.addf %63, %65 : vector<16x1xf32>
    %c0_19 = arith.constant 0 : index
    %c2_20 = arith.constant 2 : index
    %67 = vector.load %arg3[%c0_19, %c2_20] : memref<16x8xf32, #tpu.memory_space<vmem>>, vector<16x1xf32>
    tpu.vector_store %arg3[%c0_19, %c2_20], %66 {strides = array<i32>} : memref<16x8xf32, #tpu.memory_space<vmem>>, vector<16x1xf32>,
    %68 = vector.broadcast %12 : f32 to vector<16x1xf32>
    %69 = arith.mulf %58, %68 : vector<16x1xf32>
    %70 = vector.broadcast %13 : f32 to vector<16x1xf32>
    %71 = arith.mulf %61, %70 : vector<16x1xf32>
    %72 = arith.addf %69, %71 : vector<16x1xf32>
    %c0_21 = arith.constant 0 : index
    %c6 = arith.constant 6 : index
    %73 = vector.load %arg3[%c0_21, %c6] : memref<16x8xf32, #tpu.memory_space<vmem>>, vector<16x1xf32>
    tpu.vector_store %arg3[%c0_21, %c6], %72 {strides = array<i32>} : memref<16x8xf32, #tpu.memory_space<vmem>>, vector<16x1xf32>,
    %74 = vector.extract_strided_slice %8 {offsets = [0, 12], sizes = [16, 4], strides = [1, 1]} : vector<16x16xf32> to vector<16x4xf32>
    %cst_22 = arith.constant dense<0.000000e+00> : vector<16xf32>
    %75 = vector.multi_reduction <add>, %74, %cst_22 [1] : vector<16x4xf32> to vector<16xf32>
    %76 = vector.shape_cast %75 : vector<16xf32> to vector<16x1xf32>
    %cst_23 = arith.constant 6.250000e-02 : f32
    %77 = vector.broadcast %cst_23 : f32 to vector<16x1xf32>
    %78 = arith.mulf %76, %77 : vector<16x1xf32>
    %79 = vector.extract_strided_slice %9 {offsets = [0, 12], sizes = [16, 4], strides = [1, 1]} : vector<16x16xf32> to vector<16x4xf32>
    %cst_24 = arith.constant dense<0xFF800000> : vector<16xf32>
    %80 = vector.multi_reduction <maximumf>, %79, %cst_24 [1] : vector<16x4xf32> to vector<16xf32>
    %81 = vector.shape_cast %80 : vector<16xf32> to vector<16x1xf32>
    %82 = vector.broadcast %10 : f32 to vector<16x1xf32>
    %83 = arith.mulf %78, %82 : vector<16x1xf32>
    %84 = vector.broadcast %11 : f32 to vector<16x1xf32>
    %85 = arith.mulf %81, %84 : vector<16x1xf32>
    %86 = arith.addf %83, %85 : vector<16x1xf32>
    %c0_25 = arith.constant 0 : index
    %c3_26 = arith.constant 3 : index
    %87 = vector.load %arg3[%c0_25, %c3_26] : memref<16x8xf32, #tpu.memory_space<vmem>>, vector<16x1xf32>
    tpu.vector_store %arg3[%c0_25, %c3_26], %86 {strides = array<i32>} : memref<16x8xf32, #tpu.memory_space<vmem>>, vector<16x1xf32>,
    %88 = vector.broadcast %12 : f32 to vector<16x1xf32>
    %89 = arith.mulf %78, %88 : vector<16x1xf32>
    %90 = vector.broadcast %13 : f32 to vector<16x1xf32>
    %91 = arith.mulf %81, %90 : vector<16x1xf32>
    %92 = arith.addf %89, %91 : vector<16x1xf32>
    %c0_27 = arith.constant 0 : index
    %c7 = arith.constant 7 : index
    %93 = vector.load %arg3[%c0_27, %c7] : memref<16x8xf32, #tpu.memory_space<vmem>>, vector<16x1xf32>
    tpu.vector_store %arg3[%c0_27, %c7], %92 {strides = array<i32>} : memref<16x8xf32, #tpu.memory_space<vmem>>, vector<16x1xf32>,
    return
  }
  func.func @transform_0(%arg0: i32, %arg1: memref<4xf32, #tpu.memory_space<smem>>) -> (i32, i32) {
    %c0_i32 = arith.constant 0 : i32
    %c0_i32_0 = arith.constant 0 : i32
    return %arg0, %c0_i32 : i32, i32
  }
  func.func @transform_1(%arg0: i32, %arg1: memref<4xf32, #tpu.memory_space<smem>>) -> (i32, i32) {
    %c0_i32 = arith.constant 0 : i32
    %c0_i32_0 = arith.constant 0 : i32
    return %arg0, %c0_i32 : i32, i32
  }
}

</mosaic_0001>

<bundles_post_ra>
// kernel: tpu_custom_call.1
= control target key start
LH: loop header
LB: loop body
LE: loop exit
PB: predicated region body
PF: predicated region fallthrough
CT: control target
= control target key end

     0   :  { %s544_s9 = smov [#allocation3]   ;;  %s742_s0 = inlined_call_operand.hbm [shape: f32[4], index: 0, kind: input, shape index: {}]   ;;  %s743_s1 = inlined_call_operand.hbm [shape: f32[32,64], index: 1, kind: input, shape index: {}]   ;;  %s744_s2 = inlined_call_operand.vmem [shape: f32[32,8], index: 2, kind: output, shape index: {}]  }
   0x1   :  { %8 = dma.hbm_to_smem %s742_s0, 16, %s544_s9, [#allocation2] }
   0x2   :  { %522 = dma.done.wait [#allocation2], 16 }
   0x3   :  { %523 = vsyncadd [#allocation2], 4294967280 }
   0x4   :  { %10 = sfence }
   0x5   :  { %11 = vsyncpa [#allocation5], 0 }
   0x6   :  { %13 = vsyncpa [#allocation5 + $0x1], 0  ;;  %s572_s12 = smov 0   ;;  %s574_s13 = smov 0  }
   0x7   :  { %s576_s14 = smov 0   ;;  %s578_s15 = smov 0  }
   0x8 LB: > { %s405_s0 = sadd.s32 4294967295, %s542_s15   ;;  %s592_s16 = sadd.s32 1, %s542_s15   ;;  %s542_s15 = sphi %s578_s15, %s753_s15   ;;  %s538_s14 = sphi %s576_s14, %s752_s14   ;;  %s534_s13 = sphi %s574_s13, %s751_s13   ;;  %s530_s12 = sphi %s572_s12, %s750_s12  }
   0x9   : > { %s23_s17 = ssub.s32 %s542_s15, %s592_s16  ;;  %s26_s18 = sadd.s32 1, %s538_s14 }
   0xa   : > { %p24_p0 = scmp.eq.s32.totalorder %s23_s17, 0  ;;  %p33_p1 = scmp.ne.s32.totalorder %s538_s14, %s534_s13 }
   0xb   : > { %p34_p2 = scmp.eq.s32.totalorder %s542_s15, 0  ;;  %p39_p3 = scmp.ne.s32.totalorder %s534_s13, %s530_s12 }
   0xc   : > { %s602_s19 = scalar_select %p24_p0, %s538_s14, %s26_s18  }
   0xd   : > { %p35_p4 = por %p34_p2, %p33_p1  ;;  %p40_p5 = scmp.eq.s32.totalorder %s405_s0, 0 }
   0xe   : > { %p428_p6 = scmp.lt.s32.totalorder %s542_s15, 2  ;;  %s89_s21 = sand.u32 1, %s538_s14  }
   0xf   : > { %p607_p7 = por %p40_p5, %p39_p3  ;;  %s409_s22 = sshll.u32 %s89_s21, 4 }
  0x10   : > { %s421_s23 = sshll.u32 %s542_s15, 8  ;;  %s93_s27 = scalar_lea.vmem [#allocation4], %s409_s22 }
  0x11   : > { %s746_s20 = scalar_select %p607_p7, 1, 0 }
  0x12   : > { %s616_s26 = scalar_lea.hbm %s743_s1, %s421_s23  ;;  %s100_s28 = sshll.u32 %s93_s27, 4  ;;  %s618_s28 = int_to_ptr.vmem [resolvable:$true] %s100_s28 }
  0x13   : > { %p620_p8 = pnand %p428_p6, %p35_p4  ;;  %s625_s30 = scalar_lea.sflag [#allocation5], %s89_s21 }
  0x14   : > { %s478_s3 = scalar_lea.hbm %s616_s26, 256  ;;  %s483_s6 = scalar_lea.hbm %s743_s1, 512 }
  0x15   : > { %p479_p10 = scmp.ne.s32.totalorder %s616_s26, %s478_s3  ;;  %p480_p11 = pneg %p620_p8 }
  0x16   : > { %p484_p0 = scmp.lt.s32.totalorder %s616_s26, %s743_s1  ;;  %p485_p1 = scmp.lt.s32.totalorder %s483_s6, %s478_s3 }
  0x17   : > { %p481_p12 = pnand %p480_p11, %p479_p10 }
  0x18   : > { %p486_p2 = por %p485_p1, %p484_p0 }
  0x19   : > { %p482_p13 = pneg %p481_p12 }
  0x1b   : > { %p487_p3 = pnand %p486_p2, %p482_p13 }
  0x1d   : > { %490 = shalt.err (!%p487_p3)
}
  0x1e   : > { %s491_s9 = scalar_lea.vmem %s618_s28, 256  ;;  %s545_s10 = smov [#allocation4]  }
  0x1f   : > { %p492_p4 = scmp.ne.s32.totalorder %s618_s28, %s491_s9  ;;  %s496_s11 = sshll.u32 %s545_s10, 4  ;;  %s497_s11 = int_to_ptr.vmem [resolvable:$false] %s496_s11 }
  0x20   : > { %s498_s12 = scalar_lea.vmem %s497_s11, 512  ;;  %p499_p10 = scmp.lt.s32.totalorder %s618_s28, %s497_s11 }
  0x21   : > { %p494_p5 = pnand %p492_p4, %p480_p11  ;;  %p500_p12 = scmp.lt.s32.totalorder %s498_s12, %s491_s9 }
  0x23   : > { %p495_p6 = pneg %p494_p5  ;;  %p501_p9 = por %p500_p12, %p499_p10 }
  0x25   : > { %p502_p7 = pnand %p501_p9, %p495_p6 }
  0x27   : > { %505 = shalt.err (!%p502_p7)
}
  0x28   : > { %s546_s17 = smov 128   ;;  %s547_s18 = smov 8  }
  0x29   : > { %427 = dma.hbm_to_vmem [thread:$0]  (!%p620_p8), %s616_s26, 256, %s618_s28, %s625_s30, %s546_s17, %s546_s17, %s547_s18  }
  0x2a   : > { %p108_p11 = scmp.lt.s32.totalorder %s542_s15, 3  ;;  %p748_p13 = scmp.ge.s32.totalorder %s542_s15, 1 }
  0x2c   : > { %p109_p0 = pnand %p748_p13, %p108_p11 }
  0x2d   : > { %s114_s21 = sand.u32 (!%p109_p0), 1, %s534_s13   ;;  %p749_p7 = scmp.ne.s32.totalorder (!%p109_p0), %s746_s20, 0 }
  0x2e   : > { %112 = sbr.rel (%p109_p0) target bundleno = 450 (0x1c2), region = 24  ;;  %s413_s22 = sshll.u32 (!%p109_p0), %s114_s21, 4 }
  0x2f   : > { %s115_s23 = scalar_lea.sflag (!%p109_p0), [#allocation5], %s114_s21  ;;  %s118_s24 = scalar_lea.vmem (!%p109_p0), [#allocation4], %s413_s22 }
  0x33   : > { %525 = dma.done.wait (%p749_p7), %s115_s23, 256  }
  0x34   : > { %527 = vsyncadd (%p749_p7), %s115_s23, 4294967040  ;;  %v144_v0 = vld [vmem:[%s118_s24] sm:$0xff]  ;;  %s548_s25 = smov 96   ;;  %s549_s27 = smov 112   ;;  %v145_v1 = vld [vmem:[%s118_s24 + $0x8] sm:$0xff]  ;;  %vm182_vm0 = vcmask 31744  }
  0x35   : > { %158 = vrot.lane.b32.xlu1 %v144_v0, %s548_s25  ;;  %148 = vrot.lane.b32.xlu0 %v144_v0, %s549_s27  ;;  %s550_s26 = smov 80   ;;  %s551_s20 = smov 124   ;;  %vm235_vm1 = vcmask 64544   ;;  %vm274_vm2 = vcmask 97344   ;;  %vm313_vm3 = vcmask 130144   ;;  %vm205_vm4 = vcmask 7168  }
  0x36   : > { %s552_s28 = smov 120   ;;  %s553_s29 = smov 116   ;;  %vm216_vm5 = vcmask 39968   ;;  %vm248_vm6 = vcmask 15368   ;;  %vm257_vm7 = vcmask 48168   ;;  %vm287_vm8 = vcmask 23568  }
  0x37   : > { %s414_s30 = sshll.u32 %s405_s0, 1  ;;  %s178_s3 = sld [smem:[#allocation3]]  ;;  %vm296_vm9 = vcmask 56368   ;;  %vm326_vm10 = vcmask 31768   ;;  %vm335_vm11 = vcmask 64568  }
  0x38   : > { %s416_s4 = sld [smem:[#allocation3 + $0x1]]  ;;  %p139_p8 = scmp.lt.s32.totalorder %s414_s30, 3 }
  0x39   : > { %160 = vrot.lane.b32.xlu1 %v145_v1, %s548_s25  ;;  %150 = vrot.lane.b32.xlu0 %v145_v1, %s549_s27  ;;  %s418_s5 = sld [smem:[#allocation3 + $0x3]] }
  0x3a   : > { %s417_s6 = sld [smem:[#allocation3 + $0x2]]  ;;  %s755_s30 = smov (!%p139_p8, %s414_s30), 3 }
  0x3b   : > { %s415_s7 = sshll.u32 %s755_s30, 3 }
  0x3c   : > { %s677_s8 = scalar_lea.vmem %s744_s2, %s415_s7 }
  0x3d   : > { %170 = vrot.lane.b32.xlu1 %v145_v1, %s550_s26  ;;  %168 = vrot.lane.b32.xlu0 %v144_v0, %s550_s26  ;;  %v666_v44 = vstv %s178_s3 }
  0x3e   : > { %v668_v45 = vstv %s416_s4 }
  0x3f   : > { %v671_v48 = vstv %s418_s5 }
  0x40   : > { %v679_v52 = vstv %s417_s6 }
  0xa7   : > { %v159_v2 = vpop.permute.xlu1 %158  ;;  %v149_v3 = vpop.permute.xlu0 %148 }
  0xa8   : > { %v154_v4 = vadd.f32 %v149_v3, %v144_v0  ;;  %v156_v14 = vmax.f32 %v144_v0, %v149_v3 }
  0xaa   : > { %v164_v9 = vadd.f32 %v159_v2, %v154_v4  ;;  %v166_v16 = vmax.f32 %v156_v14, %v159_v2 }
  0xab   : > { %v161_v5 = vpop.permute.xlu1 %160  ;;  %v151_v6 = vpop.permute.xlu0 %150 }
  0xac   : > { %v155_v7 = vadd.f32 %v151_v6, %v145_v1  ;;  %v157_v15 = vmax.f32 %v145_v1, %v151_v6 }
  0xae   : > { %v165_v8 = vadd.f32 %v161_v5, %v155_v7  ;;  %v167_v17 = vmax.f32 %v157_v15, %v161_v5 }
  0xaf   : > { %v171_v10 = vpop.permute.xlu1 %170  ;;  %v169_v11 = vpop.permute.xlu0 %168 }
  0xb0   : > { %v175_v12 = vadd.f32 %v171_v10, %v165_v8  ;;  %v174_v13 = vadd.f32 %v169_v11, %v164_v9  ;;  %v176_v18 = vmax.f32 %v166_v16, %v169_v11  ;;  %v177_v20 = vmax.f32 %v167_v17, %v171_v10 }
  0xb2   : > { %223 = vrot.lane.b32.xlu1 %v175_v12, %s551_s20  ;;  %221 = vrot.lane.b32.xlu0 %v174_v13, %s551_s20  ;;  %v183_v19 = vsel %vm182_vm0, %v174_v13, 0.0  ;;  %v191_v21 = vsel %vm182_vm0, %v176_v18, -inf  ;;  %v186_v22 = vsel %vm182_vm0, %v175_v12, 0.0  ;;  %v194_v23 = vsel %vm182_vm0, %v177_v20, -inf }
  0xb3   : > { %v236_v24 = vsel %vm235_vm1, %v176_v18, -inf  ;;  %v239_v25 = vsel %vm235_vm1, %v177_v20, -inf  ;;  %v275_v26 = vsel %vm274_vm2, %v176_v18, -inf  ;;  %v278_v27 = vsel %vm274_vm2, %v177_v20, -inf }
  0xb4   : > { %v314_v40 = vsel %vm313_vm3, %v176_v18, -inf  ;;  %v317_v41 = vsel %vm313_vm3, %v177_v20, -inf }
  0xb6   : > { %262 = vrot.lane.b32.xlu1 %v175_v12, %s552_s28  ;;  %260 = vrot.lane.b32.xlu0 %v174_v13, %s552_s28 }
  0xba   : > { %301 = vrot.lane.b32.xlu1 %v175_v12, %s553_s29  ;;  %299 = vrot.lane.b32.xlu0 %v174_v13, %s553_s29 }
  0xd9   : > { %184 = vadd.xlane.f32.xlu0 %v183_v19 }
  0xdd   : > { %192 = vmax.xlane.f32.xlu0 %v191_v21 }
  0xde   : > { %187 = vadd.xlane.f32.xlu1 %v186_v22 }
  0xe1   : > { %195 = vmax.xlane.f32.xlu0 %v194_v23 }
  0xe2   : > { %237 = vmax.xlane.f32.xlu1 %v236_v24 }
  0xe5   : > { %240 = vmax.xlane.f32.xlu0 %v239_v25 }
  0xe6   : > { %276 = vmax.xlane.f32.xlu1 %v275_v26 }
  0xe9   : > { %279 = vmax.xlane.f32.xlu0 %v278_v27 }
 0x124   : > { %v224_v28 = vpop.permute.xlu1 %223  ;;  %v222_v29 = vpop.permute.xlu0 %221 }
 0x125   : > { %v227_v30 = vsel %vm182_vm0, %v222_v29, 0.0  ;;  %v230_v31 = vsel %vm182_vm0, %v224_v28, 0.0 }
 0x126   : > { %228 = vadd.xlane.f32.xlu1 %v227_v30  ;;  %231 = vadd.xlane.f32.xlu0 %v230_v31 }
 0x128   : > { %v263_v32 = vpop.permute.xlu1 %262  ;;  %v261_v33 = vpop.permute.xlu0 %260 }
 0x129   : > { %v266_v34 = vsel %vm182_vm0, %v261_v33, 0.0  ;;  %v269_v35 = vsel %vm182_vm0, %v263_v32, 0.0 }
 0x12a   : > { %267 = vadd.xlane.f32.xlu1 %v266_v34  ;;  %270 = vadd.xlane.f32.xlu0 %v269_v35 }
 0x12c   : > { %v302_v36 = vpop.permute.xlu1 %301  ;;  %v300_v37 = vpop.permute.xlu0 %299 }
 0x12d   : > { %v305_v38 = vsel %vm182_vm0, %v300_v37, 0.0  ;;  %v308_v39 = vsel %vm182_vm0, %v302_v36, 0.0 }
 0x12e   : > { %306 = vadd.xlane.f32.xlu1 %v305_v38  ;;  %309 = vadd.xlane.f32.xlu0 %v308_v39 }
 0x132   : > { %315 = vmax.xlane.f32.xlu1 %v314_v40  ;;  %318 = vmax.xlane.f32.xlu0 %v317_v41 }
 0x162   : > { %v185_v42 = vpop.xlane.xlu0 %184 }
 0x163   : > { %v189_v43 = vmul.f32 0.0625, %v185_v42 }
 0x165   : > { %v198_v47 = vmul.f32 %v666_v44, %v189_v43  ;;  %v209_v60 = vmul.f32 %v679_v52, %v189_v43 }
 0x166   : > { %v193_v46 = vpop.xlane.xlu0 %192 }
 0x167   : > { %v201_v49 = vmul.f32 %v668_v45, %v193_v46  ;;  %v188_v50 = vpop.xlane.xlu1 %187  ;;  %v212_v54 = vmul.f32 %v671_v48, %v193_v46 }
 0x168   : > { %v190_v51 = vmul.f32 0.0625, %v188_v50 }
 0x169   : > { %v203_v53 = vadd.f32 %v201_v49, %v198_v47  ;;  %v214_v62 = vadd.f32 %v212_v54, %v209_v60 }
 0x16a   : > { %v199_v55 = vmul.f32 %v666_v44, %v190_v51  ;;  %v196_v56 = vpop.xlane.xlu0 %195  ;;  %v210_v57 = vmul.f32 %v679_v52, %v190_v51 }
 0x16b   : > { %206 = vst.msk [vmem:[%s677_s8] sm:$0xff] %vm205_vm4, %v203_v53  ;;  %v202_v58 = vmul.f32 %v668_v45, %v196_v56  ;;  %v213_v59 = vmul.f32 %v671_v48, %v196_v56  ;;  %v238_v0 = vpop.xlane.xlu1 %237 }
 0x16c   : > { %217 = vst.msk [vmem:[%s677_s8] sm:$0xff] %vm216_vm5, %v214_v62  ;;  %v244_v8 = vmul.f32 %v238_v0, %v668_v45  ;;  %v253_v16 = vmul.f32 %v238_v0, %v671_v48 }
 0x16d   : > { %v204_v61 = vadd.f32 %v202_v58, %v199_v55  ;;  %v215_v63 = vadd.f32 %v213_v59, %v210_v57 }
 0x16e   : > { %v241_v1 = vpop.xlane.xlu0 %240 }
 0x16f   : > { %207 = vst.msk [vmem:[%s677_s8 + $0x8] sm:$0xff] %vm205_vm4, %v204_v61  ;;  %v277_v2 = vpop.xlane.xlu1 %276  ;;  %v245_v9 = vmul.f32 %v241_v1, %v668_v45  ;;  %v254_v17 = vmul.f32 %v241_v1, %v671_v48 }
 0x170   : > { %218 = vst.msk [vmem:[%s677_s8 + $0x8] sm:$0xff] %vm216_vm5, %v215_v63  ;;  %v283_v22 = vmul.f32 %v277_v2, %v668_v45  ;;  %v292_v34 = vmul.f32 %v277_v2, %v671_v48 }
 0x172   : > { %v280_v3 = vpop.xlane.xlu0 %279 }
 0x173   : > { %v284_v23 = vmul.f32 %v280_v3, %v668_v45  ;;  %v293_v35 = vmul.f32 %v280_v3, %v671_v48 }
 0x1af   : > { %v229_v4 = vpop.xlane.xlu1 %228  ;;  %v232_v5 = vpop.xlane.xlu0 %231 }
 0x1b0   : > { %v233_v6 = vmul.f32 0.0625, %v229_v4  ;;  %v234_v7 = vmul.f32 0.0625, %v232_v5 }
 0x1b2   : > { %v242_v10 = vmul.f32 %v233_v6, %v666_v44  ;;  %v251_v11 = vmul.f32 %v233_v6, %v679_v52  ;;  %v243_v12 = vmul.f32 %v234_v7, %v666_v44  ;;  %v252_v13 = vmul.f32 %v234_v7, %v679_v52 }
 0x1b3   : > { %v268_v14 = vpop.xlane.xlu1 %267  ;;  %v271_v15 = vpop.xlane.xlu0 %270 }
 0x1b4   : > { %v246_v18 = vadd.f32 %v244_v8, %v242_v10  ;;  %v247_v19 = vadd.f32 %v245_v9, %v243_v12  ;;  %v272_v20 = vmul.f32 0.0625, %v268_v14  ;;  %v273_v21 = vmul.f32 0.0625, %v271_v15 }
 0x1b5   : > { %v255_v24 = vadd.f32 %v253_v16, %v251_v11  ;;  %v256_v25 = vadd.f32 %v254_v17, %v252_v13 }
 0x1b6   : > { %249 = vst.msk [vmem:[%s677_s8] sm:$0xff] %vm248_vm6, %v246_v18  ;;  %250 = vst.msk [vmem:[%s677_s8 + $0x8] sm:$0xff] %vm248_vm6, %v247_v19  ;;  %v281_v26 = vmul.f32 %v272_v20, %v666_v44  ;;  %v290_v27 = vmul.f32 %v272_v20, %v679_v52  ;;  %v282_v28 = vmul.f32 %v273_v21, %v666_v44 }
 0x1b7   : > { %v291_v29 = vmul.f32 %v273_v21, %v679_v52  ;;  %v307_v30 = vpop.xlane.xlu1 %306  ;;  %v310_v31 = vpop.xlane.xlu0 %309  ;;  %258 = vst.msk [vmem:[%s677_s8] sm:$0xff] %vm257_vm7, %v255_v24  ;;  %259 = vst.msk [vmem:[%s677_s8 + $0x8] sm:$0xff] %vm257_vm7, %v256_v25 }
 0x1b8   : > { %v311_v32 = vmul.f32 0.0625, %v307_v30  ;;  %v312_v33 = vmul.f32 0.0625, %v310_v31  ;;  %v285_v36 = vadd.f32 %v283_v22, %v281_v26  ;;  %v286_v37 = vadd.f32 %v284_v23, %v282_v28 }
 0x1b9   : > { %v294_v38 = vadd.f32 %v292_v34, %v290_v27  ;;  %v295_v39 = vadd.f32 %v293_v35, %v291_v29 }
 0x1ba   : > { %288 = vst.msk [vmem:[%s677_s8] sm:$0xff] %vm287_vm8, %v285_v36  ;;  %v320_v40 = vmul.f32 %v311_v32, %v666_v44  ;;  %289 = vst.msk [vmem:[%s677_s8 + $0x8] sm:$0xff] %vm287_vm8, %v286_v37  ;;  %v321_v43 = vmul.f32 %v312_v33, %v666_v44  ;;  %v329_v51 = vmul.f32 %v311_v32, %v679_v52 }
 0x1bb   : > { %v316_v41 = vpop.xlane.xlu1 %315  ;;  %v319_v42 = vpop.xlane.xlu0 %318  ;;  %297 = vst.msk [vmem:[%s677_s8] sm:$0xff] %vm296_vm9, %v294_v38  ;;  %298 = vst.msk [vmem:[%s677_s8 + $0x8] sm:$0xff] %vm296_vm9, %v295_v39  ;;  %v330_v55 = vmul.f32 %v312_v33, %v679_v52 }
 0x1bc   : > { %v322_v46 = vmul.f32 %v316_v41, %v668_v45  ;;  %v331_v47 = vmul.f32 %v316_v41, %v671_v48  ;;  %v323_v49 = vmul.f32 %v319_v42, %v668_v45  ;;  %v332_v50 = vmul.f32 %v319_v42, %v671_v48 }
 0x1be   : > { %v324_v53 = vadd.f32 %v322_v46, %v320_v40  ;;  %v325_v54 = vadd.f32 %v323_v49, %v321_v43  ;;  %v333_v44 = vadd.f32 %v331_v47, %v329_v51  ;;  %v334_v56 = vadd.f32 %v332_v50, %v330_v55 }
 0x1c0   : > { %327 = vst.msk [vmem:[%s677_s8] sm:$0xff] %vm326_vm10, %v324_v53  ;;  %328 = vst.msk [vmem:[%s677_s8 + $0x8] sm:$0xff] %vm326_vm10, %v325_v54 }
 0x1c1   : > { %336 = vst.msk [vmem:[%s677_s8] sm:$0xff] %vm335_vm11, %v333_v44  ;;  %337 = vst.msk [vmem:[%s677_s8 + $0x8] sm:$0xff] %vm335_vm11, %v334_v56 }
 0x1c2 PF: > { %p16_p9 = scmp.ge.s32.totalorder %s592_s16, 4   ;;  %s750_s12 = smov %s534_s13 }
 0x1c3   : > { %s751_s13 = smov %s538_s14  ;;  %s752_s14 = smov %s602_s19 }
 0x1c4   : > { %s753_s15 = smov %s592_s16  ;;  %18 = sbr.rel (!%p16_p9) target bundleno = 8 (0x8), region = 64 }
 0x1c9   :  { %360 = vsyncpa [#allocation5], 1 }
 0x1ca   :  { %362 = vsyncpa [#allocation5 + $0x1], 1 }

</bundles_post_ra>
